<compile_context>
chip_gen: v6e
topology: v6e:2x2x1
jax: 0.10.0
libtpu: 0.0.40
codegen_flags: <defaults>
</compile_context>

<pallas_src>
import jax
import jax.numpy as jnp
from jax.experimental import pallas as pl
from jax.experimental.pallas import tpu as pltpu


# ---------------------------------------------------------------------------
# Kernels
# ---------------------------------------------------------------------------
def _joint_kernel(x_ref, w_ref, b_ref, o_ref):
    # Whole [block_k=D, block_n] weight tile resident: one MXU matmul, f32
    # accumulation, bias + ReLU epilogue, single lane-dense store.
    h = jnp.dot(x_ref[...], w_ref[...], preferred_element_type=jnp.float32)
    o_ref[...] = jnp.maximum(h + b_ref[...], 0.0).astype(o_ref.dtype)


def _joint_kernel_ksplit(x_ref, w_ref, b_ref, o_ref, acc_ref):
    # K-tiled variant (large D): accumulate in f32 VMEM scratch across the
    # "arbitrary" K axis; bias + ReLU epilogue on the last K step only.
    k = pl.program_id(2)

    @pl.when(k == 0)
    def _():
        acc_ref[...] = jnp.zeros_like(acc_ref)

    acc_ref[...] += jnp.dot(x_ref[...], w_ref[...],
                            preferred_element_type=jnp.float32)

    @pl.when(k == pl.num_programs(2) - 1)
    def _():
        o_ref[...] = jnp.maximum(acc_ref[...] + b_ref[...],
                                 0.0).astype(o_ref.dtype)


# ---------------------------------------------------------------------------
# Tile planning
# ---------------------------------------------------------------------------
def _round_up(x, m):
    return -(-x // m) * m


def _sublane_multiple(dtype):
    # Sub-32-bit dtypes pack along sublanes: keep tiles vreg-dense.
    return {4: 8, 2: 16, 1: 32}.get(jnp.dtype(dtype).itemsize, 8)


def _largest_aligned_divisor(total, align, limit):
    """Largest multiple of `align` that divides `total` and is <= limit."""
    limit = max(align, min(limit, total))
    cand = (limit // align) * align
    while cand > align:
        if total % cand == 0:
            return cand
        cand -= align
    return align


def _plan_tiles(B, D, H_pad, in_dtype, out_dtype):
    it_in = jnp.dtype(in_dtype).itemsize
    it_out = jnp.dtype(out_dtype).itemsize
    sub = max(_sublane_multiple(in_dtype), _sublane_multiple(out_dtype))

    # Per-TensorCore VMEM budget.  On v7x each TC has its own 64 MiB and holds
    # its own copy of the resident weights when the batch axis is sharded, so
    # the budget must be per-TC, not per-chip.
    try:
        vmem_cap = pltpu.get_tpu_info().vmem_capacity_bytes
    except Exception:
        vmem_cap = 64 * 1024 * 1024  # conservative (v7x per-TC size)
    vmem_limit = min((vmem_cap * 3) // 4, 96 * 1024 * 1024)
    budget = int(vmem_limit * 0.85)  # headroom for compiler-internal scratch

    # ---- weight tiling ----------------------------------------------------
    w_limit = budget // 2  # weights get at most half the budget
    if D * H_pad * it_in <= w_limit:
        # Fully resident, single-buffered (constant index map).
        block_k, block_n = D, H_pad
    else:
        # N tiling first (parallel axis); weight tile becomes double-buffered.
        per_col = 2 * D * it_in
        n_cols = max(128, (w_limit // per_col) // 128 * 128)
        block_n = _largest_aligned_divisor(H_pad, 128, n_cols)
        block_k = D
        # Still too big per tile -> K tiling ("arbitrary" axis + accumulator),
        # only when D splits into exact multiples of 128 (no garbage in the
        # reduction from partial blocks).
        if 2 * D * block_n * it_in > w_limit and D % 128 == 0:
            per_row_k = 2 * block_n * it_in
            k_rows = max(128, (w_limit // per_row_k) // 128 * 128)
            block_k = _largest_aligned_divisor(D, 128, k_rows)

    n_n = -(-H_pad // block_n)
    n_k = -(-D // block_k)

    w_buffers = 1 if (n_n == 1 and n_k == 1) else 2
    b_buffers = 1 if n_n == 1 else 2
    fixed = w_buffers * block_k * block_n * it_in + b_buffers * block_n * 4

    # ---- batch tiling -------------------------------------------------------
    per_row = 2 * block_k * it_in + 2 * block_n * it_out  # x + out, dbl-buffered
    if n_k > 1:
        per_row += 4 * block_n  # f32 accumulator scratch (single copy)
    avail = max(budget - fixed, per_row * sub)
    block_b = (avail // per_row) // sub * sub
    block_b = max(sub, min(block_b, 1024, _round_up(B, sub)))

    return block_b, block_n, block_k, n_n, n_k, vmem_limit


def _const_spec(shape, index_map):
    """BlockSpec with a constant index map, single-buffered if supported."""
    try:
        return pl.BlockSpec(shape, index_map, pipeline_mode=pl.Buffered(1))
    except TypeError:  # older JAX without pipeline_mode kwarg
        return pl.BlockSpec(shape, index_map)


# ---------------------------------------------------------------------------
# Wrapper
# ---------------------------------------------------------------------------
def joint_encoder(x, w1, b1, w2, b2, *, block_b=None):
    """JointEncoder forward: concat(relu(x@w1+b1), relu(x@w2+b2), axis=-1)."""
    B, D = x.shape
    H1, H2 = w1.shape[1], w2.shape[1]
    H = H1 + H2
    H_pad = _round_up(H, 128)  # lane-dense output stores
    out_dtype = x.dtype
    itemsize = jnp.dtype(out_dtype).itemsize

    # Fuse per-encoder params once, outside the kernel (lane-dense N = H_pad).
    w = jnp.concatenate([w1, w2], axis=1).astype(x.dtype)
    b = jnp.concatenate([b1.reshape(1, H1), b2.reshape(1, H2)],
                        axis=1).astype(jnp.float32)
    if H_pad != H:
        w = jnp.pad(w, ((0, 0), (0, H_pad - H)))
        b = jnp.pad(b, ((0, 0), (0, H_pad - H)))

    blk_b, blk_n, blk_k, n_n, n_k, vmem_limit = _plan_tiles(
        B, D, H_pad, x.dtype, out_dtype)
    if block_b is not None:
        blk_b = block_b
    n_b = -(-B // blk_b)  # partial last batch block handled by Pallas (masked)

    # BlockSpecs.  Weights/bias single-buffered when their index map is
    # constant over the whole grid.
    x_spec = pl.BlockSpec((blk_b, blk_k), lambda i, j, k: (i, k))
    if n_n == 1 and n_k == 1:
        w_spec = _const_spec((blk_k, blk_n), lambda i, j, k: (0, 0))
    else:
        w_spec = pl.BlockSpec((blk_k, blk_n), lambda i, j, k: (k, j))
    if n_n == 1:
        b_spec = _const_spec((1, blk_n), lambda i, j, k: (0, 0))
    else:
        b_spec = pl.BlockSpec((1, blk_n), lambda i, j, k: (0, j))
    o_spec = pl.BlockSpec((blk_b, blk_n), lambda i, j, k: (i, j))

    if n_k > 1:
        kernel = _joint_kernel_ksplit
        scratch = [pltpu.VMEM((blk_b, blk_n), jnp.float32)]
    else:
        kernel = _joint_kernel
        scratch = []

    cost = pl.CostEstimate(
        flops=2 * B * D * H_pad,
        transcendentals=0,
        bytes_accessed=itemsize * (B * D + D * H_pad + B * H_pad) + 4 * H_pad,
    )

    out = pl.pallas_call(
        kernel,
        out_shape=jax.ShapeDtypeStruct((B, H_pad), out_dtype),
        grid_spec=pltpu.PrefetchScalarGridSpec(
            num_scalar_prefetch=0,
            grid=(n_b, n_n, n_k),
            in_specs=[x_spec, w_spec, b_spec],
            out_specs=o_spec,
            scratch_shapes=scratch,
        ),
        compiler_params=pltpu.CompilerParams(
            dimension_semantics=("parallel", "parallel", "arbitrary"),
            vmem_limit_bytes=vmem_limit,
        ),
        cost_estimate=cost,
    )(x, w, b)

    return out if H_pad == H else out[:, :H]
    # TODO(synk): the fusion assumes every sub-encoder is Linear + elementwise
    # activation; heterogeneous/non-elementwise sub-encoders would need their
    # own kernels feeding a concat.


def joint_encoder_ref(x, w1, b1, w2, b2):
    h1 = jnp.maximum(x @ w1 + b1, 0.0)
    h2 = jnp.maximum(x @ w2 + b2, 0.0)
    return jnp.concatenate([h1, h2], axis=-1)


if __name__ == "__main__":
    # Small shapes consistent with the module: batch=8, input dim=32,
    # two sub-encoders with output sizes 64 and 64 -> joint output 128.
    B, D, H1, H2 = 8, 32, 64, 64

    key = jax.random.PRNGKey(0)
    kx, kw1, kb1, kw2, kb2 = jax.random.split(key, 5)

    x = jax.random.normal(kx, (B, D), dtype=jnp.float32)
    # nn.Linear-style parameters, stored [in, out].
    w1 = jax.random.normal(kw1, (D, H1), dtype=jnp.float32) * (1.0 / jnp.sqrt(D))
    b1 = jax.random.normal(kb1, (1, H1), dtype=jnp.float32) * 0.01
    w2 = jax.random.normal(kw2, (D, H2), dtype=jnp.float32) * (1.0 / jnp.sqrt(D))
    b2 = jax.random.normal(kb2, (1, H2), dtype=jnp.float32) * 0.01

    out = joint_encoder(x, w1, b1, w2, b2)
    out = jax.block_until_ready(out)

    ref = joint_encoder_ref(x, w1, b1, w2, b2)
    assert out.shape == (B, H1 + H2), out.shape
    assert out.dtype == x.dtype, out.dtype
    assert jnp.allclose(out, ref, atol=1e-5, rtol=1e-5), "mismatch vs reference"

    print("KERNEL_OK")
</pallas_src>

<mosaic_0001>
module attributes {stable_mosaic.version = 11 : i64} {
  func.func @_joint_kernel(%arg0: i32, %arg1: i32, %arg2: i32, %arg3: memref<8x32xf32, #tpu.memory_space<vmem>>, %arg4: memref<32x128xf32, #tpu.memory_space<vmem>>, %arg5: memref<1x128xf32, #tpu.memory_space<vmem>>, %arg6: memref<8x128xf32, #tpu.memory_space<vmem>>) attributes {dimension_semantics = [#tpu.dimension_semantics<parallel>, #tpu.dimension_semantics<parallel>, #tpu.dimension_semantics<arbitrary>], iteration_bounds = array<i64: 1, 1, 1>, scalar_prefetch = 0 : i64, scratch_operands = 0 : i64, tpu.core_type = #tpu.core_type<tc>, window_params = [{transform_indices = @transform_0, window_bounds = array<i64: 8, 32>}, {pipeline_mode = #tpu.pipeline_mode<synchronous>, transform_indices = @transform_1, window_bounds = array<i64: 32, 128>}, {pipeline_mode = #tpu.pipeline_mode<synchronous>, transform_indices = @transform_2, window_bounds = array<i64: 1, 128>}, {transform_indices = @transform_3, window_bounds = array<i64: 8, 128>}]} {
    %c0 = arith.constant 0 : index
    %c0_0 = arith.constant 0 : index
    %0 = vector.load %arg3[%c0, %c0_0] : memref<8x32xf32, #tpu.memory_space<vmem>>, vector<8x32xf32>
    %c0_1 = arith.constant 0 : index
    %c0_2 = arith.constant 0 : index
    %1 = vector.load %arg4[%c0_1, %c0_2] : memref<32x128xf32, #tpu.memory_space<vmem>>, vector<32x128xf32>
    %cst = arith.constant dense<0.000000e+00> : vector<8x128xf32>
    %2 = tpu.matmul %0, %1, %cst {dimension_numbers = #tpu.dot_dimension_numbers<[1], [0], [0], [1], [0, 0, 1, 1], [], []>} : vector<8x32xf32>, vector<32x128xf32>, vector<8x128xf32> -> vector<8x128xf32>
    %c0_3 = arith.constant 0 : index
    %c0_4 = arith.constant 0 : index
    %3 = vector.load %arg5[%c0_3, %c0_4] : memref<1x128xf32, #tpu.memory_space<vmem>>, vector<1x128xf32>
    %4 = vector.broadcast %3 : vector<1x128xf32> to vector<8x128xf32>
    %5 = arith.addf %2, %4 : vector<8x128xf32>
    %cst_5 = arith.constant 0.000000e+00 : f32
    %6 = vector.broadcast %cst_5 : f32 to vector<8x128xf32>
    %7 = arith.maximumf %5, %6 : vector<8x128xf32>
    %c0_6 = arith.constant 0 : index
    %c0_7 = arith.constant 0 : index
    %8 = vector.load %arg6[%c0_6, %c0_7] : memref<8x128xf32, #tpu.memory_space<vmem>>, vector<8x128xf32>
    tpu.vector_store %arg6[%c0_6, %c0_7], %7 {strides = array<i32>} : memref<8x128xf32, #tpu.memory_space<vmem>>, vector<8x128xf32>,
    return
  }
  func.func @transform_0(%arg0: i32, %arg1: i32, %arg2: i32) -> (i32, i32) {
    %c0_i32 = arith.constant 0 : i32
    return %arg0, %arg2 : i32, i32
  }
  func.func @transform_1(%arg0: i32, %arg1: i32, %arg2: i32) -> (i32, i32) {
    %c0_i32 = arith.constant 0 : i32
    %c0_i32_0 = arith.constant 0 : i32
    %c0_i32_1 = arith.constant 0 : i32
    return %c0_i32, %c0_i32_0 : i32, i32
  }
  func.func @transform_2(%arg0: i32, %arg1: i32, %arg2: i32) -> (i32, i32) {
    %c0_i32 = arith.constant 0 : i32
    %c0_i32_0 = arith.constant 0 : i32
    %c0_i32_1 = arith.constant 0 : i32
    return %c0_i32, %c0_i32_0 : i32, i32
  }
  func.func @transform_3(%arg0: i32, %arg1: i32, %arg2: i32) -> (i32, i32) {
    %c0_i32 = arith.constant 0 : i32
    return %arg0, %arg1 : i32, i32
  }
}

</mosaic_0001>

<bundles_post_ra>
// kernel: tpu_custom_call.1
= control target key start
LH: loop header
LB: loop body
LE: loop exit
PB: predicated region body
PF: predicated region fallthrough
CT: control target
= control target key end

     0   :  { %8 = vsyncpa [#allocation3], 0  ;;  %s275_s0 = inlined_call_operand.hbm [shape: f32[8,32], index: 0, kind: input, shape index: {}]   ;;  %s276_s1 = inlined_call_operand.hbm [shape: f32[32,128], index: 1, kind: input, shape index: {}]   ;;  %s277_s2 = inlined_call_operand.vmem [shape: f32[1,128], index: 2, kind: input, shape index: {}]   ;;  %s278_s3 = inlined_call_operand.hbm [shape: f32[8,128], index: 3, kind: output, shape index: {}]  }
   0x1   :  { %9 = vsyncpa [#allocation6], 0 }
   0x2   :  { %10 = vsyncpa [#allocation4], 0  ;;  %s236_s12 = smov [#allocation2]   ;;  %s237_s14 = smov [#allocation5]  }
   0x3   :  { %s17_s13 = sshll.u32 %s236_s12, 4  ;;  %s26_s15 = sshll.u32 %s237_s14, 4  ;;  %s18_s13 = int_to_ptr.vmem [resolvable:$true] %s17_s13  ;;  %s27_s15 = int_to_ptr.vmem [resolvable:$true] %s26_s15 }
   0x4   :  { %s178_s16 = scalar_lea.vmem %s18_s13, 128  ;;  %p183_p1 = scmp.lt.s32.totalorder %s18_s13, %s18_s13 }
   0x5   :  { %p179_p0 = scmp.ne.s32.totalorder %s18_s13, %s178_s16  ;;  %p184_p2 = scmp.lt.s32.totalorder %s178_s16, %s178_s16 }
   0x7   :  { %p185_p3 = por %p184_p2, %p183_p1 }
   0x9   :  { %p186_p4 = pnand %p185_p3, %p179_p0 }
   0xb   :  { %189 = shalt.err (!%p186_p4)
}
   0xc   :  { %20 = dma.hbm_to_vmem [thread:$0]  %s275_s0, 128, %s18_s13, [#allocation3]  }
   0xd   :  { %s198_s19 = scalar_lea.vmem %s27_s15, 512  ;;  %p203_p6 = scmp.lt.s32.totalorder %s27_s15, %s27_s15 }
   0xe   :  { %p199_p5 = scmp.ne.s32.totalorder %s27_s15, %s198_s19  ;;  %p204_p7 = scmp.lt.s32.totalorder %s198_s19, %s198_s19 }
  0x10   :  { %p205_p8 = por %p204_p7, %p203_p6 }
  0x12   :  { %p206_p9 = pnand %p205_p8, %p199_p5 }
  0x14   :  { %209 = shalt.err (!%p206_p9)
}
  0x15   :  { %s238_s20 = smov 128   ;;  %s239_s21 = smov 8  }
  0x16   :  { %32 = dma.hbm_to_vmem [thread:$0]  %s276_s1, 512, %s27_s15, [#allocation6], %s238_s20, %s238_s20, %s239_s21  }
  0x17   :  { %230 = dma.done.wait [#allocation3], 128  }
  0x18   :  { %231 = vsyncadd [#allocation3], 4294967168 }
  0x19   :  { %232 = dma.done.wait [#allocation6], 512  }
  0x1a   :  { %233 = vsyncadd [#allocation6], 4294966784  ;;  %v240_v0 = vmov 0.0   ;;  %vm241_vm0 = vmmov 0   ;;  %v45_v1 = vld [vmem:[#allocation5 + $0x18] sm:$0xff]  ;;  %v44_v2 = vld [vmem:[#allocation5 + $0x10] sm:$0xff] }
  0x1b   :  { %152 = vmatprep.subr.mxu0 %v240_v0  ;;  %160 = vmatprep.mubr.msk.f32.mxu0 %vm241_vm0, %v240_v0  ;;  %v43_v3 = vld [vmem:[#allocation5 + $0x8] sm:$0xff]  ;;  %v42_v4 = vld [vmem:[#allocation5] sm:$0xff]  ;;  %v41_v5 = vld [vmem:[#allocation2] sm:$0xff]  ;;  %vm53_vm1 = vcmask 261120   ;;  %s242_s24 = smov [#allocation7]  }
  0x1c   :  { %153 = vmatpush3.msra.mxu0 %v45_v1  ;;  %v145_v6 = vld [vmem:[%s277_s2] ss:$0 sm:$0xff]  ;;  %s135_s25 = sshll.u32 %s242_s24, 4  ;;  %s136_s25 = int_to_ptr.vmem [resolvable:$true] %s135_s25 }
  0x1d   :  { %154 = vmatprep.subr.mxu0 %v240_v0  ;;  %s210_s26 = scalar_lea.vmem %s136_s25, 128  ;;  %p215_p11 = scmp.lt.s32.totalorder %s136_s25, %s136_s25 }
  0x1e   :  { %155 = vmatpush3.msra.mxu0 %v44_v2  ;;  %p211_p10 = scmp.ne.s32.totalorder %s136_s25, %s210_s26  ;;  %p216_p12 = scmp.lt.s32.totalorder %s210_s26, %s210_s26 }
  0x1f   :  { %156 = vmatprep.subr.mxu0 %v240_v0 }
  0x20   :  { %157 = vmatpush3.msra.mxu0 %v43_v3  ;;  %p217_p13 = por %p216_p12, %p215_p11 }
  0x21   :  { %158 = vmatprep.subr.mxu0 %v240_v0 }
  0x22   :  { %159 = vmatpush3.msra.mxu0 %v42_v4  ;;  %p218_p0 = pnand %p217_p13, %p211_p10 }
  0x23   :  { %161 = vmatmul.mubr.msk.f32.vlgmr.msra.gmra.mxu0 %vm53_vm1, %v41_v5 }
  0xe3   :  { %v123_v7 = vpop.f32.mrf.mxu0 }
  0xe4   :  { %v124_v8 = vadd.f32 %v145_v6, %v123_v7 }
  0xe5   :  { %v162_v9 = vpop.f32.mrf.mxu0 }
  0xe6   :  { %v127_v10 = vmax.f32 %v124_v8, 0.0 }
  0xe8   :  { %128 = vst [vmem:[#allocation7] sm:$0xff] %v127_v10 }
  0xe9   :  { %221 = shalt.err (!%p218_p0)
}
  0xea   :  { %138 = dma.vmem_to_hbm [thread:$0]  %s136_s25, 128, %s278_s3, [#allocation4]  }
  0xeb   :  { %234 = dma.done.wait [#allocation4], 128  }
  0xec   :  { %235 = vsyncadd [#allocation4], 4294967168 }
  0xed   :  { %142 = vsyncpa [#allocation3], 1 }
  0xee   :  { %143 = vsyncpa [#allocation6], 1 }
  0xef   :  { %144 = vsyncpa [#allocation4], 1 }

</bundles_post_ra>
